<compile_context>
chip_gen: v5e
topology: v5e:2x2
jax: 0.10.0
libtpu: 0.0.40
codegen_flags: <defaults>
</compile_context>

<pallas_src>
import jax
import jax.numpy as jnp
from jax.experimental import pallas as pl
from jax.experimental.pallas import tpu as pltpu


def _round_up(n, m):
    return ((n + m - 1) // m) * m


def _select_tiling(batch, batch_tile_cap):
    """Pick (tb, b_pad) for the batch grid axis.

    tb is a multiple of 8 (sublanes).  Prefer a tile that divides the
    8-rounded batch exactly (zero dead rows) but never shrink below ~half the
    cap just to avoid padding; keep >= 2 grid blocks when the batch allows so
    both TensorCores get work on v7x.
    """
    b8 = _round_up(max(batch, 1), 8)
    cap = max(8, _round_up(batch_tile_cap, 8))
    hi = min(cap, b8)
    lo = max(8, _round_up(hi // 2, 8))
    tb = None
    for t in range(hi, lo - 1, -8):
        if b8 % t == 0:
            tb = t
            break
    if tb is None:
        tb = hi                            # accept up to tb-1 padded rows
    if b8 // tb < 2 and b8 >= 16:          # ensure v7x's second TC has a block
        half_hi = max(8, _round_up(tb // 2, 8))
        half_lo = max(8, _round_up(half_hi // 2, 8))
        tb_half = None
        for t in range(half_hi, half_lo - 1, -8):
            if b8 % t == 0:
                tb_half = t
                break
        tb = tb_half if tb_half is not None else half_hi
    b_pad = _round_up(b8, tb)
    return tb, b_pad


def qnetwork_kernel(x_ref, w1_ref, b1_ref, w2_ref, b2_ref, w3_ref, b3_ref, out_ref):
    """One grid step: a (TB, state_dim) slab of states through the 3-layer MLP.

    Layer 1 (tiny K) runs on the VPU as a broadcast multiply-accumulate;
    layers 2 and 3 are MXU matmuls with bf16 operands and f32 accumulation.
    Output block is (TB, action_dim) — no lane padding, 16x less writeback.
    """
    x = x_ref[...]                                   # (TB, S) float32
    state_dim = x.shape[1]

    # ---- Layer 1 on the VPU: h1 = sum_s x[:, s] * w1[s, :] + b1 (static unroll, S tiny)
    h1 = b1_ref[...] + x[:, 0:1] * w1_ref[0:1, :]    # (TB, H) f32
    for s in range(1, state_dim):
        h1 = h1 + x[:, s:s + 1] * w1_ref[s:s + 1, :]
    h1 = jnp.maximum(h1, 0.0)                        # ReLU

    # ---- Layer 2 on the MXU (H x H), bf16 operands, f32 accumulation
    h2 = jnp.dot(h1.astype(w2_ref.dtype), w2_ref[...],
                 preferred_element_type=jnp.float32) + b2_ref[...]
    h2 = jnp.maximum(h2, 0.0)                        # ReLU

    # ---- Layer 3 on the MXU (H x A), bf16 operands, f32 accumulation
    q = jnp.dot(h2.astype(w3_ref.dtype), w3_ref[...],
                preferred_element_type=jnp.float32) + b3_ref[...]

    out_ref[...] = q.astype(out_ref.dtype)           # (TB, A)


def prepare_qnetwork_params(params):
    """One-time parameter prep (hoisted out of the per-call hot path):
    cast the MXU weights (layers 2 and 3) to bf16.  Biases and the tiny
    layer-1 weights stay f32."""
    w1, b1, w2, b2, w3, b3 = params
    return (w1, b1, w2.astype(jnp.bfloat16), b2, w3.astype(jnp.bfloat16), b3)


def qnetwork_forward(x, params, *, batch_tile=1024):
    """Run the fused QNetwork forward pass as one batch-tiled pallas_call.

    `params` should come from prepare_qnetwork_params (bf16 MXU weights); f32
    weights also work (the kernel casts activations to the weight dtype).
    """
    w1, b1, w2, b2, w3, b3 = params
    batch, state_dim = x.shape
    hidden_dim = w1.shape[1]
    action_dim = w3.shape[1]

    tb, b_pad = _select_tiling(batch, batch_tile)
    x_pad = x if b_pad == batch else jnp.pad(x, ((0, b_pad - batch), (0, 0)))

    grid = (b_pad // tb,)

    flops = 2 * b_pad * (state_dim * hidden_dim
                         + hidden_dim * hidden_dim
                         + hidden_dim * action_dim)
    bytes_accessed = (
        4 * b_pad * state_dim                                          # x
        + 4 * (state_dim * hidden_dim + hidden_dim)                    # layer 1 (f32)
        + w2.dtype.itemsize * hidden_dim * hidden_dim + 4 * hidden_dim  # layer 2
        + w3.dtype.itemsize * hidden_dim * action_dim + 4 * action_dim  # layer 3
        + 4 * b_pad * action_dim                                       # output
    )

    out = pl.pallas_call(
        qnetwork_kernel,
        out_shape=jax.ShapeDtypeStruct((b_pad, action_dim), jnp.float32),
        grid=grid,
        in_specs=[
            pl.BlockSpec((tb, state_dim), lambda i: (i, 0)),           # x: tiled over batch
            pl.BlockSpec((state_dim, hidden_dim), lambda i: (0, 0)),   # w1: resident
            pl.BlockSpec((1, hidden_dim), lambda i: (0, 0)),           # b1: resident
            pl.BlockSpec((hidden_dim, hidden_dim), lambda i: (0, 0)),  # w2: resident
            pl.BlockSpec((1, hidden_dim), lambda i: (0, 0)),           # b2: resident
            pl.BlockSpec((hidden_dim, action_dim), lambda i: (0, 0)),  # w3: resident
            pl.BlockSpec((1, action_dim), lambda i: (0, 0)),           # b3: resident
        ],
        out_specs=pl.BlockSpec((tb, action_dim), lambda i: (i, 0)),
        compiler_params=pltpu.CompilerParams(
            dimension_semantics=("parallel",),   # batch blocks split across TCs (v7x)
            # Working set is <1 MiB even at tb=8192; 32 MiB leaves huge headroom
            # and stays well under v7x's 64 MiB physical VMEM.
            vmem_limit_bytes=32 * 1024 * 1024,
        ),
        cost_estimate=pl.CostEstimate(
            flops=flops, transcendentals=0, bytes_accessed=int(bytes_accessed)),
    )(x_pad, w1, b1, w2, b2, w3, b3)

    return out[:batch, :]


def init_qnetwork_params(key, state_dim=2, action_dim=8, hidden_dim=128):
    """Deterministic init mimicking PyTorch's default Linear init
    (uniform(-1/sqrt(fan_in), 1/sqrt(fan_in)) for weight and bias).
    Weights are stored as (in_features, out_features)."""
    def linear(k, fan_in, fan_out):
        kw, kb = jax.random.split(k)
        bound = 1.0 / jnp.sqrt(fan_in)
        w = jax.random.uniform(kw, (fan_in, fan_out), jnp.float32, -bound, bound)
        b = jax.random.uniform(kb, (1, fan_out), jnp.float32, -bound, bound)
        return w, b

    k1, k2, k3 = jax.random.split(key, 3)
    w1, b1 = linear(k1, state_dim, hidden_dim)
    w2, b2 = linear(k2, hidden_dim, hidden_dim)
    w3, b3 = linear(k3, hidden_dim, action_dim)
    return (w1, b1, w2, b2, w3, b3)


def qnetwork_reference(x, params):
    """Pure-JAX f32 reference matching the PyTorch module exactly."""
    w1, b1, w2, b2, w3, b3 = params
    h1 = jnp.maximum(x @ w1 + b1, 0.0)
    h2 = jnp.maximum(h1 @ w2 + b2, 0.0)
    return h2 @ w3 + b3


def qnetwork_reference_mixed(x, prepared_params):
    """Pure-JAX reference with the same mixed precision as the kernel
    (bf16 MXU operands, f32 accumulation)."""
    w1, b1, w2, b2, w3, b3 = prepared_params
    h1 = jnp.maximum(x @ w1 + b1, 0.0)
    h2 = jnp.maximum(
        jnp.dot(h1.astype(w2.dtype), w2, preferred_element_type=jnp.float32) + b2, 0.0)
    return jnp.dot(h2.astype(w3.dtype), w3, preferred_element_type=jnp.float32) + b3


if __name__ == "__main__":
    key = jax.random.PRNGKey(0)
    k_params, k_x = jax.random.split(key)

    state_dim, action_dim, hidden_dim = 2, 8, 128
    batch = 512   # batched states (RL eval/training slab); tiling picks tb=256, grid=(2,)

    params = init_qnetwork_params(k_params, state_dim, action_dim, hidden_dim)
    prepared = prepare_qnetwork_params(params)   # one-time bf16 cast, out of hot path

    # Small grid-world-like (row, col) states as floats.
    x = jax.random.uniform(k_x, (batch, state_dim), jnp.float32, 0.0, 10.0)

    q_pallas = qnetwork_forward(x, prepared)
    jax.block_until_ready(q_pallas)
    assert q_pallas.shape == (batch, action_dim)

    # Tight check against a reference with identical mixed precision.
    q_mixed = qnetwork_reference_mixed(x, prepared)
    assert jnp.allclose(q_pallas, q_mixed, atol=2e-3, rtol=1e-3), "mismatch vs mixed ref"

    # Loose sanity check against the full-f32 PyTorch-equivalent reference
    # (bf16 MXU operands lose ~3 decimal digits of mantissa).
    q_f32 = qnetwork_reference(x, params)
    assert jnp.allclose(q_pallas, q_f32, atol=1e-1, rtol=2e-2), "mismatch vs f32 ref"

    # Also check a tiny, non-tile-aligned batch (single compact block).
    x_small = x[:8]
    q_small = qnetwork_forward(x_small, prepared)
    jax.block_until_ready(q_small)
    assert jnp.allclose(q_small, q_mixed[:8], atol=2e-3, rtol=1e-3), "small-batch mismatch"

    print("KERNEL_OK")
</pallas_src>

<mosaic_0001>
module attributes {stable_mosaic.version = 11 : i64} {
  func.func @qnetwork_kernel(%arg0: i32, %arg1: memref<256x2xf32, #tpu.memory_space<vmem>>, %arg2: memref<2x128xf32, #tpu.memory_space<vmem>>, %arg3: memref<1x128xf32, #tpu.memory_space<vmem>>, %arg4: memref<128x128xbf16, #tpu.memory_space<vmem>>, %arg5: memref<1x128xf32, #tpu.memory_space<vmem>>, %arg6: memref<128x8xbf16, #tpu.memory_space<vmem>>, %arg7: memref<1x8xf32, #tpu.memory_space<vmem>>, %arg8: memref<256x8xf32, #tpu.memory_space<vmem>>) attributes {dimension_semantics = [#tpu.dimension_semantics<parallel>], iteration_bounds = array<i64: 2>, scalar_prefetch = 0 : i64, scratch_operands = 0 : i64, tpu.core_type = #tpu.core_type<tc>, window_params = [{transform_indices = @transform_0, window_bounds = array<i64: 256, 2>}, {pipeline_mode = #tpu.pipeline_mode<synchronous>, transform_indices = @transform_1, window_bounds = array<i64: 2, 128>}, {pipeline_mode = #tpu.pipeline_mode<synchronous>, transform_indices = @transform_2, window_bounds = array<i64: 1, 128>}, {pipeline_mode = #tpu.pipeline_mode<synchronous>, transform_indices = @transform_3, window_bounds = array<i64: 128, 128>}, {pipeline_mode = #tpu.pipeline_mode<synchronous>, transform_indices = @transform_4, window_bounds = array<i64: 1, 128>}, {pipeline_mode = #tpu.pipeline_mode<synchronous>, transform_indices = @transform_5, window_bounds = array<i64: 128, 8>}, {pipeline_mode = #tpu.pipeline_mode<synchronous>, transform_indices = @transform_6, window_bounds = array<i64: 1, 8>}, {transform_indices = @transform_7, window_bounds = array<i64: 256, 8>}]} {
    %c0 = arith.constant 0 : index
    %c0_0 = arith.constant 0 : index
    %0 = vector.load %arg1[%c0, %c0_0] : memref<256x2xf32, #tpu.memory_space<vmem>>, vector<256x2xf32>
    %c0_1 = arith.constant 0 : index
    %c0_2 = arith.constant 0 : index
    %1 = vector.load %arg3[%c0_1, %c0_2] : memref<1x128xf32, #tpu.memory_space<vmem>>, vector<1x128xf32>
    %2 = vector.extract_strided_slice %0 {offsets = [0, 0], sizes = [256, 1], strides = [1, 1]} : vector<256x2xf32> to vector<256x1xf32>
    %c0_3 = arith.constant 0 : index
    %c0_4 = arith.constant 0 : index
    %3 = vector.load %arg2[%c0_3, %c0_4] : memref<2x128xf32, #tpu.memory_space<vmem>>, vector<1x128xf32>
    %4 = vector.broadcast %2 : vector<256x1xf32> to vector<256x128xf32>
    %5 = vector.broadcast %3 : vector<1x128xf32> to vector<256x128xf32>
    %6 = arith.mulf %4, %5 : vector<256x128xf32>
    %7 = vector.broadcast %1 : vector<1x128xf32> to vector<256x128xf32>
    %8 = arith.addf %7, %6 : vector<256x128xf32>
    %9 = vector.extract_strided_slice %0 {offsets = [0, 1], sizes = [256, 1], strides = [1, 1]} : vector<256x2xf32> to vector<256x1xf32>
    %c1 = arith.constant 1 : index
    %c0_5 = arith.constant 0 : index
    %10 = vector.load %arg2[%c1, %c0_5] : memref<2x128xf32, #tpu.memory_space<vmem>>, vector<1x128xf32>
    %11 = vector.broadcast %9 : vector<256x1xf32> to vector<256x128xf32>
    %12 = vector.broadcast %10 : vector<1x128xf32> to vector<256x128xf32>
    %13 = arith.mulf %11, %12 : vector<256x128xf32>
    %14 = arith.addf %8, %13 : vector<256x128xf32>
    %cst = arith.constant 0.000000e+00 : f32
    %15 = vector.broadcast %cst : f32 to vector<256x128xf32>
    %16 = arith.maximumf %14, %15 : vector<256x128xf32>
    %17 = arith.truncf %16 : vector<256x128xf32> to vector<256x128xbf16>
    %c0_6 = arith.constant 0 : index
    %c0_7 = arith.constant 0 : index
    %18 = vector.load %arg4[%c0_6, %c0_7] : memref<128x128xbf16, #tpu.memory_space<vmem>>, vector<128x128xbf16>
    %cst_8 = arith.constant dense<0.000000e+00> : vector<256x128xf32>
    %19 = tpu.matmul %17, %18, %cst_8 {dimension_numbers = #tpu.dot_dimension_numbers<[1], [0], [0], [1], [0, 0, 1, 1], [], []>} : vector<256x128xbf16>, vector<128x128xbf16>, vector<256x128xf32> -> vector<256x128xf32>
    %c0_9 = arith.constant 0 : index
    %c0_10 = arith.constant 0 : index
    %20 = vector.load %arg5[%c0_9, %c0_10] : memref<1x128xf32, #tpu.memory_space<vmem>>, vector<1x128xf32>
    %21 = vector.broadcast %20 : vector<1x128xf32> to vector<256x128xf32>
    %22 = arith.addf %19, %21 : vector<256x128xf32>
    %cst_11 = arith.constant 0.000000e+00 : f32
    %23 = vector.broadcast %cst_11 : f32 to vector<256x128xf32>
    %24 = arith.maximumf %22, %23 : vector<256x128xf32>
    %25 = arith.truncf %24 : vector<256x128xf32> to vector<256x128xbf16>
    %c0_12 = arith.constant 0 : index
    %c0_13 = arith.constant 0 : index
    %26 = vector.load %arg6[%c0_12, %c0_13] : memref<128x8xbf16, #tpu.memory_space<vmem>>, vector<128x8xbf16>
    %cst_14 = arith.constant dense<0.000000e+00> : vector<256x8xf32>
    %27 = tpu.matmul %25, %26, %cst_14 {dimension_numbers = #tpu.dot_dimension_numbers<[1], [0], [0], [1], [0, 0, 1, 1], [], []>} : vector<256x128xbf16>, vector<128x8xbf16>, vector<256x8xf32> -> vector<256x8xf32>
    %c0_15 = arith.constant 0 : index
    %c0_16 = arith.constant 0 : index
    %28 = vector.load %arg7[%c0_15, %c0_16] : memref<1x8xf32, #tpu.memory_space<vmem>>, vector<1x8xf32>
    %29 = vector.broadcast %28 : vector<1x8xf32> to vector<256x8xf32>
    %30 = arith.addf %27, %29 : vector<256x8xf32>
    %c0_17 = arith.constant 0 : index
    %c0_18 = arith.constant 0 : index
    %31 = vector.load %arg8[%c0_17, %c0_18] : memref<256x8xf32, #tpu.memory_space<vmem>>, vector<256x8xf32>
    tpu.vector_store %arg8[%c0_17, %c0_18], %30 {strides = array<i32>} : memref<256x8xf32, #tpu.memory_space<vmem>>, vector<256x8xf32>,
    return
  }
  func.func @transform_0(%arg0: i32) -> (i32, i32) {
    %c0_i32 = arith.constant 0 : i32
    %c0_i32_0 = arith.constant 0 : i32
    return %arg0, %c0_i32 : i32, i32
  }
  func.func @transform_1(%arg0: i32) -> (i32, i32) {
    %c0_i32 = arith.constant 0 : i32
    %c0_i32_0 = arith.constant 0 : i32
    %c0_i32_1 = arith.constant 0 : i32
    return %c0_i32, %c0_i32_0 : i32, i32
  }
  func.func @transform_2(%arg0: i32) -> (i32, i32) {
    %c0_i32 = arith.constant 0 : i32
    %c0_i32_0 = arith.constant 0 : i32
    %c0_i32_1 = arith.constant 0 : i32
    return %c0_i32, %c0_i32_0 : i32, i32
  }
  func.func @transform_3(%arg0: i32) -> (i32, i32) {
    %c0_i32 = arith.constant 0 : i32
    %c0_i32_0 = arith.constant 0 : i32
    %c0_i32_1 = arith.constant 0 : i32
    return %c0_i32, %c0_i32_0 : i32, i32
  }
  func.func @transform_4(%arg0: i32) -> (i32, i32) {
    %c0_i32 = arith.constant 0 : i32
    %c0_i32_0 = arith.constant 0 : i32
    %c0_i32_1 = arith.constant 0 : i32
    return %c0_i32, %c0_i32_0 : i32, i32
  }
  func.func @transform_5(%arg0: i32) -> (i32, i32) {
    %c0_i32 = arith.constant 0 : i32
    %c0_i32_0 = arith.constant 0 : i32
    %c0_i32_1 = arith.constant 0 : i32
    return %c0_i32, %c0_i32_0 : i32, i32
  }
  func.func @transform_6(%arg0: i32) -> (i32, i32) {
    %c0_i32 = arith.constant 0 : i32
    %c0_i32_0 = arith.constant 0 : i32
    %c0_i32_1 = arith.constant 0 : i32
    return %c0_i32, %c0_i32_0 : i32, i32
  }
  func.func @transform_7(%arg0: i32) -> (i32, i32) {
    %c0_i32 = arith.constant 0 : i32
    %c0_i32_0 = arith.constant 0 : i32
    return %arg0, %c0_i32 : i32, i32
  }
}

</mosaic_0001>

<bundles_post_ra>
// kernel: tpu_custom_call.1
= control target key start
LH: loop header
LB: loop body
LE: loop exit
PB: predicated region body
PF: predicated region fallthrough
CT: control target
= control target key end

     0   :  { %s1443_s24 = smov 0   ;;  %s1856_s0 = inlined_call_operand.vmem [shape: f32[512,2], index: 0, kind: input, shape index: {}]   ;;  %s1857_s1 = inlined_call_operand.vmem [shape: f32[2,128], index: 1, kind: input, shape index: {}]   ;;  %s1858_s2 = inlined_call_operand.vmem [shape: f32[1,128], index: 2, kind: input, shape index: {}]   ;;  %s1859_s3 = inlined_call_operand.vmem [shape: bf16[128,128], index: 3, kind: input, shape index: {}]   ;;  %s1860_s4 = inlined_call_operand.vmem [shape: f32[1,128], index: 4, kind: input, shape index: {}]   ;;  %s1861_s5 = inlined_call_operand.vmem [shape: bf16[128,8], index: 5, kind: input, shape index: {}]   ;;  %s1862_s6 = inlined_call_operand.vmem [shape: f32[1,8], index: 6, kind: input, shape index: {}]   ;;  %s1863_s7 = inlined_call_operand.vmem [shape: f32[512,8], index: 7, kind: output, shape index: {}]  }
   0x1 LB: > { %s1237_s25 = sadd.s32 4294967295, %s1399_s24   ;;  %p1241_p0 = scmp.ge.s32.totalorder %s1399_s24, 1  ;;  %s1399_s24 = sphi %s1443_s24, %s17_s24  }
   0x2   : > { %p238_p1 = scmp.lt.s32.totalorder %s1399_s24, 3 }
   0x4   : > { %p239_p2 = pnand %p1241_p0, %p238_p1 }
   0x5   : > { %s1242_s26 = sshll.u32 (!%p239_p2), %s1237_s25, 5 }
   0x6   : > { %242 = sbr.rel (%p239_p2) target bundleno = 613 (0x265), region = 48  ;;  %p271_p3 = scmp.lt.s32.totalorder (!%p239_p2), %s1242_s26, 63 }
   0xb   : > { %v1401_v0 = vmov 1   ;;  %v1402_v1 = vmov 0   ;;  %s1865_s26 = smov (!%p271_p3, %s1242_s26), 63  ;;  %v1319_v16 = vld [vmem:[%s1859_s3 + $0x38] sm:$0xff]  ;;  %v1318_v19 = vld [vmem:[%s1859_s3 + $0x30] sm:$0xff]  ;;  %v1317_v20 = vld [vmem:[%s1859_s3 + $0x28] sm:$0xff] }
   0xc   : > { %1355 = vset.pattern.permute.xlu1 %v1401_v0  ;;  %1356 = vset.pattern.permute.xlu2 %v1402_v1  ;;  %s1243_s27 = sshll.u32 %s1865_s26, 3  ;;  %v1316_v22 = vld [vmem:[%s1859_s3 + $0x20] sm:$0xff]  ;;  %v1315_v24 = vld [vmem:[%s1859_s3 + $0x18] sm:$0xff]  ;;  %v1314_v26 = vld [vmem:[%s1859_s3 + $0x10] sm:$0xff]  ;;  %vm1148_vm0 = vcmask 64512  }
   0xd   : > { %1354 = vset.pattern.permute.xlu0 %v1402_v1  ;;  %s1462_s30 = scalar_lea.vmem %s1856_s0, %s1243_s27  ;;  %1328 = vmatpush.bf16.msra.mxu2 %v1319_v16  ;;  %v1313_v29 = vld [vmem:[%s1859_s3 + $0x8] sm:$0xff]  ;;  %v1312_v31 = vld [vmem:[%s1859_s3] sm:$0xff]  ;;  %s1747_s12 = scalar_lea.vmem %s1863_s7, %s1243_s27 }
   0xe   : > { %v298_v2 = vld [vmem:[%s1462_s30 + $0x80] sm:$0xff]  ;;  %v299_v4 = vld [vmem:[%s1462_s30 + $0x88] sm:$0xff]  ;;  %v300_v7 = vld [vmem:[%s1462_s30 + $0x90] sm:$0xff]  ;;  %854 = vmatpush.bf16.msra.mxu0 %v1319_v16 }
   0xf   : > { %v282_v3 = vld [vmem:[%s1462_s30] sm:$0xff]  ;;  %610 = vperm.xlu1 %1355, %v298_v2   ;;  %398 = vperm.xlu0 %1354, %v298_v2   ;;  %v283_v5 = vld [vmem:[%s1462_s30 + $0x8] sm:$0xff]  ;;  %v301_v9 = vld [vmem:[%s1462_s30 + $0x98] sm:$0xff] }
  0x10   : > { %318 = vperm.xlu2 %1356, %v282_v3   ;;  %v303_v6 = vld [vmem:[%s1462_s30 + $0xa8] sm:$0xff]  ;;  %v284_v10 = vld [vmem:[%s1462_s30 + $0x10] sm:$0xff]  ;;  %v285_v11 = vld [vmem:[%s1462_s30 + $0x18] sm:$0xff] }
  0x11   : > { %v1471_v8 = vld [vmem:[%s1462_s30 + $0xc8] sm:$0xff]  ;;  %v302_v12 = vld [vmem:[%s1462_s30 + $0xa0] sm:$0xff]  ;;  %v305_v15 = vld [vmem:[%s1462_s30 + $0xb8] sm:$0xff]  ;;  %1329 = vmatpush.bf16.msra.mxu2 %v1318_v19 }
  0x12   : > { %v286_v13 = vld [vmem:[%s1462_s30 + $0x20] sm:$0xff]  ;;  %v287_v14 = vld [vmem:[%s1462_s30 + $0x28] sm:$0xff]  ;;  %v304_v17 = vld [vmem:[%s1462_s30 + $0xb0] sm:$0xff]  ;;  %855 = vmatpush.bf16.msra.mxu0 %v1318_v19 }
  0x13   : > { %v288_v18 = vld [vmem:[%s1462_s30 + $0x30] sm:$0xff]  ;;  %v290_v21 = vld [vmem:[%s1462_s30 + $0x40] sm:$0xff]  ;;  %v289_v23 = vld [vmem:[%s1462_s30 + $0x38] sm:$0xff] }
  0x14   : > { %v309_v25 = vld [vmem:[%s1462_s30 + $0xd8] sm:$0xff]  ;;  %v306_v28 = vld [vmem:[%s1462_s30 + $0xc0] sm:$0xff]  ;;  %v292_v30 = vld [vmem:[%s1462_s30 + $0x50] sm:$0xff] }
  0x15   : > { %1330 = vmatpush.bf16.msra.mxu2 %v1317_v20  ;;  %v291_v34 = vld [vmem:[%s1462_s30 + $0x48] sm:$0xff]  ;;  %v1536_v35 = vld [vmem:[%s1857_s1] ss:$0 sm:$0xff]  ;;  %v308_v41 = vld [vmem:[%s1462_s30 + $0xd0] sm:$0xff] }
  0x16   : > { %856 = vmatpush.bf16.msra.mxu0 %v1317_v20  ;;  %v1541_v39 = vld [vmem:[%s1858_s2] ss:$0 sm:$0xff]  ;;  %v1548_v42 = vld [vmem:[%s1857_s1 + $0x1] ss:$0 sm:$0xff]  ;;  %v1552_v43 = vld [vmem:[%s1462_s30 + $0xe8] sm:$0xff] }
  0x17   : > { %614 = vperm.xlu1 %1355, %v299_v4   ;;  %403 = vperm.xlu0 %1354, %v299_v4   ;;  %v294_v58 = vld [vmem:[%s1462_s30 + $0x60] sm:$0xff]  ;;  %v293_v62 = vld [vmem:[%s1462_s30 + $0x58] sm:$0xff] }
  0x18   : > { %323 = vperm.xlu2 %1356, %v283_v5   ;;  %v1569_v63 = vld [vmem:[%s1462_s30 + $0xf8] sm:$0xff] }
  0x19   : > { %1331 = vmatpush.bf16.msra.mxu2 %v1316_v22 }
  0x1a   : > { %857 = vmatpush.bf16.msra.mxu0 %v1316_v22 }
  0x1d   : > { %1332 = vmatpush.bf16.msra.mxu2 %v1315_v24 }
  0x1e   : > { %858 = vmatpush.bf16.msra.mxu0 %v1315_v24 }
  0x1f   : > { %423 = vperm.xlu0 %1354, %v303_v6   ;;  %550 = vperm.xlu1 %1355, %v283_v5  }
  0x20   : > { %408 = vperm.xlu2 %1356, %v300_v7  }
  0x21   : > { %1333 = vmatpush.bf16.msra.mxu2 %v1314_v26 }
  0x22   : > { %859 = vmatpush.bf16.msra.mxu0 %v1314_v26 }
  0x25   : > { %1334 = vmatpush.bf16.msra.mxu2 %v1313_v29 }
  0x26   : > { %860 = vmatpush.bf16.msra.mxu0 %v1313_v29 }
  0x27   : > { %443 = vperm.xlu0 %1354, %v1471_v8   ;;  %1357 = vset.pattern.permute.xlu1 %v1402_v1 }
  0x28   : > { %1358 = vset.pattern.permute.xlu2 %v1401_v0  ;;  %413 = vperm.xlu1 %1357, %v301_v9  }
  0x29   : > { %618 = vperm.xlu2 %1358, %v300_v7   ;;  %1335 = vmatpush.bf16.msra.mxu2 %v1312_v31 }
  0x2a   : > { %861 = vmatpush.bf16.msra.mxu0 %v1312_v31 }
  0x2f   : > { %1369 = vset.pattern.permute.xlu0 %v1401_v0 }
  0x30   : > { %328 = vperm.xlu1 %1357, %v284_v10   ;;  %546 = vperm.xlu0 %1369, %v282_v3  }
  0x31   : > { %1359 = vset.pattern.permute.xlu2 %v1402_v1 }
  0x32   : > { %333 = vperm.xlu2 %1359, %v285_v11  }
  0x38   : > { %1360 = vset.pattern.permute.xlu1 %v1401_v0  ;;  %622 = vperm.xlu0 %1369, %v301_v9   ;;  %v1580_v9 = vld [vmem:[%s1462_s30 + $0x70] sm:$0xff] }
  0x39   : > { %558 = vperm.xlu1 %1360, %v285_v11  }
  0x3a   : > { %418 = vperm.xlu2 %1359, %v302_v12  }
  0x40   : > { %554 = vperm.xlu0 %1369, %v284_v10  }
  0x41   : > { %626 = vperm.xlu1 %1360, %v302_v12  }
  0x42   : > { %1361 = vset.pattern.permute.xlu2 %v1401_v0 }
  0x43   : > { %630 = vperm.xlu2 %1361, %v303_v6  }
  0x48   : > { %562 = vperm.xlu0 %1369, %v286_v13  }
  0x49   : > { %1362 = vset.pattern.permute.xlu1 %v1402_v1 }
  0x4a   : > { %338 = vperm.xlu1 %1362, %v286_v13  }
  0x4b   : > { %1363 = vset.pattern.permute.xlu2 %v1402_v1 }
  0x4c   : > { %343 = vperm.xlu2 %1363, %v287_v14  }
  0x50   : > { %638 = vperm.xlu0 %1369, %v305_v15  }
  0x52   : > { %1364 = vset.pattern.permute.xlu1 %v1401_v0 }
  0x53   : > { %566 = vperm.xlu1 %1364, %v287_v14  }
  0x54   : > { %428 = vperm.xlu2 %1363, %v304_v17  }
  0x58   : > { %570 = vperm.xlu0 %1369, %v288_v18  }
  0x5b   : > { %1365 = vset.pattern.permute.xlu1 %v1402_v1 }
  0x5c   : > { %1366 = vset.pattern.permute.xlu2 %v1401_v0  ;;  %433 = vperm.xlu1 %1365, %v305_v15  }
  0x5d   : > { %634 = vperm.xlu2 %1366, %v304_v17  }
  0x60   : > { %578 = vperm.xlu0 %1369, %v290_v21  }
  0x64   : > { %348 = vperm.xlu1 %1365, %v288_v18  }
  0x65   : > { %1367 = vset.pattern.permute.xlu2 %v1402_v1 }
  0x66   : > { %353 = vperm.xlu2 %1367, %v289_v23  }
  0x68   : > { %654 = vperm.xlu0 %1369, %v309_v25  }
  0x6a   : > { %v1516_v27 = vpop.permute.xlu2 %318 }
  0x6b   : > { %v477_v4 = vmul.f32 %v1536_v35, %v1516_v27 }
  0x6c   : > { %1368 = vset.pattern.permute.xlu1 %v1401_v0 }
  0x6d   : > { %574 = vperm.xlu1 %1368, %v289_v23   ;;  %v512_v13 = vadd.f32 %v1541_v39, %v477_v4 }
  0x6e   : > { %438 = vperm.xlu2 %1367, %v306_v28  }
  0x70   : > { %586 = vperm.xlu0 %1369, %v292_v30  }
  0x72   : > { %v324_v32 = vpop.permute.xlu2 %323 }
  0x73   : > { %v478_v3 = vmul.f32 %v1536_v35, %v324_v32 }
  0x75   : > { %642 = vperm.xlu1 %1368, %v306_v28   ;;  %v513_v7 = vadd.f32 %v1541_v39, %v478_v3 }
  0x76   : > { %1370 = vset.pattern.permute.xlu2 %v1401_v0 }
  0x77   : > { %646 = vperm.xlu2 %1370, %v1471_v8   ;;  %v310_v8 = vld [vmem:[%s1462_s30 + $0xe0] sm:$0xff] }
  0x78   : > { %1378 = vset.pattern.permute.xlu0 %v1402_v1 }
  0x79   : > { %463 = vperm.xlu0 %1378, %v1552_v43  }
  0x7a   : > { %v409_v33 = vpop.permute.xlu2 %408 }
  0x7b   : > { %v495_v10 = vmul.f32 %v1536_v35, %v409_v33 }
  0x7d   : > { %1371 = vset.pattern.permute.xlu1 %v1402_v1  ;;  %v530_v17 = vadd.f32 %v1541_v39, %v495_v10 }
  0x7e   : > { %358 = vperm.xlu1 %1371, %v290_v21  }
  0x7f   : > { %1372 = vset.pattern.permute.xlu2 %v1402_v1 }
  0x80   : > { %363 = vperm.xlu2 %1372, %v291_v34  }
  0x81   : > { %v611_v36 = vpop.permute.xlu1 %610  ;;  %v399_v37 = vpop.permute.xlu0 %398  ;;  %1382 = vset.pattern.permute.xlu0 %v1401_v0 }
  0x82   : > { %v493_v40 = vmul.f32 %v1536_v35, %v399_v37  ;;  %v690_v47 = vmul.f32 %v1548_v42, %v611_v36  ;;  %594 = vperm.xlu0 %1382, %v294_v58  }
  0x83   : > { %v619_v38 = vpop.permute.xlu2 %618 }
  0x84   : > { %v528_v44 = vadd.f32 %v1541_v39, %v493_v40  ;;  %v692_v18 = vmul.f32 %v1548_v42, %v619_v38 }
  0x86   : > { %1373 = vset.pattern.permute.xlu1 %v1401_v0  ;;  %v722_v52 = vadd.f32 %v690_v47, %v528_v44  ;;  %v724_v23 = vadd.f32 %v692_v18, %v530_v17  ;;  %v295_v47 = vld [vmem:[%s1462_s30 + $0x68] sm:$0xff] }
  0x87   : > { %582 = vperm.xlu1 %1373, %v291_v34  }
  0x88   : > { %448 = vperm.xlu2 %1372, %v308_v41   ;;  %v754_v54 = vmax.f32 %v722_v52, 0.0  ;;  %v756_v31 = vmax.f32 %v724_v23, 0.0 }
  0x89   : > { %v615_v45 = vpop.permute.xlu1 %614  ;;  %v404_v46 = vpop.permute.xlu0 %403 }
  0x8a   : > { %v494_v48 = vmul.f32 %v1536_v35, %v404_v46  ;;  %v691_v49 = vmul.f32 %v1548_v42, %v615_v45  ;;  %670 = vperm.xlu0 %1382, %v1569_v63  }
  0x8c   : > { %v529_v50 = vadd.f32 %v1541_v39, %v494_v48  ;;  %v334_v51 = vpop.permute.xlu2 %333 }
  0x8d   : > { %v480_v26 = vmul.f32 %v1536_v35, %v334_v51 }
  0x8e   : > { %v723_v53 = vadd.f32 %v691_v49, %v529_v50 }
  0x8f   : > { %1374 = vset.pattern.permute.xlu1 %v1402_v1  ;;  %v515_v32 = vadd.f32 %v1541_v39, %v480_v26 }
  0x90   : > { %453 = vperm.xlu1 %1374, %v309_v25   ;;  %v755_v55 = vmax.f32 %v723_v53, 0.0  ;;  %1375 = vset.pattern.permute.xlu2 %v1401_v0 }
  0x91   : > { %v551_v56 = vpop.permute.xlu1 %550  ;;  %v424_v57 = vpop.permute.xlu0 %423  ;;  %650 = vperm.xlu2 %1375, %v308_v41  }
  0x92   : > { %v778_v59 = vpack.c.bf16 %v755_v55, %v754_v54  ;;  %v675_v5 = vmul.f32 %v1548_v42, %v551_v56  ;;  %602 = vperm.xlu0 %1382, %v1580_v9   ;;  %v498_v37 = vmul.f32 %v1536_v35, %v424_v57 }
  0x94   : > { %902 = vmatmul.bf16.vlgmr.msra.gmra.mxu2 %v778_v59  ;;  %v419_v60 = vpop.permute.xlu2 %418  ;;  %v707_v14 = vadd.f32 %v675_v5, %v513_v7  ;;  %v533_v49 = vadd.f32 %v1541_v39, %v498_v37  ;;  %v312_v59 = vld [vmem:[%s1462_s30 + $0xf0] sm:$0xff] }
  0x95   : > { %v497_v40 = vmul.f32 %v1536_v35, %v419_v60 }
  0x96   : > { %v739_v19 = vmax.f32 %v707_v14, 0.0 }
  0x97   : > { %v532_v53 = vadd.f32 %v1541_v39, %v497_v40 }
  0x98   : > { %368 = vperm.xlu1 %1374, %v292_v30  }
  0x99   : > { %v1564_v61 = vpop.permute.xlu0 %443  ;;  %1376 = vset.pattern.permute.xlu2 %v1402_v1 }
  0x9a   : > { %v414_v2 = vpop.permute.xlu1 %413  ;;  %373 = vperm.xlu2 %1376, %v293_v62  }
  0x9b   : > { %v496_v20 = vmul.f32 %v1536_v35, %v414_v2 }
  0x9d   : > { %v631_v6 = vpop.permute.xlu2 %630  ;;  %v531_v27 = vadd.f32 %v1541_v39, %v496_v20 }
  0x9e   : > { %v695_v50 = vmul.f32 %v1548_v42, %v631_v6 }
  0xa0   : > { %1377 = vset.pattern.permute.xlu1 %v1401_v0  ;;  %v727_v56 = vadd.f32 %v695_v50, %v533_v49 }
  0xa1   : > { %590 = vperm.xlu1 %1377, %v293_v62  }
  0xa2   : > { %v329_v11 = vpop.permute.xlu1 %328  ;;  %v547_v12 = vpop.permute.xlu0 %546  ;;  %458 = vperm.xlu2 %1376, %v310_v8   ;;  %v759_v62 = vmax.f32 %v727_v56, 0.0 }
  0xa3   : > { %v674_v15 = vmul.f32 %v1548_v42, %v547_v12  ;;  %v479_v33 = vmul.f32 %v1536_v35, %v329_v11 }
  0xa5   : > { %v706_v16 = vadd.f32 %v674_v15, %v512_v13 }
  0xa6   : > { %v344_v24 = vpop.permute.xlu2 %343 }
  0xa7   : > { %v738_v21 = vmax.f32 %v706_v16, 0.0  ;;  %v482_v5 = vmul.f32 %v1536_v35, %v344_v24 }
  0xa9   : > { %658 = vperm.xlu1 %1377, %v310_v8   ;;  %v770_v22 = vpack.c.bf16 %v739_v19, %v738_v21  ;;  %v517_v11 = vadd.f32 %v1541_v39, %v482_v5 }
  0xaa   : > { %v623_v25 = vpop.permute.xlu0 %622  ;;  %1379 = vset.pattern.permute.xlu2 %v1401_v0 }
  0xab   : > { %v693_v28 = vmul.f32 %v1548_v42, %v623_v25  ;;  %v559_v29 = vpop.permute.xlu1 %558  ;;  %862 = vmatmul.bf16.vlgmr.msra.gmra.mxu0 %v770_v22  ;;  %662 = vperm.xlu2 %1379, %v1552_v43   ;;  %v514_v43 = vadd.f32 %v1541_v39, %v479_v33  ;;  %v297_v22 = vld [vmem:[%s1462_s30 + $0x78] sm:$0xff] }
  0xac   : > { %v677_v36 = vmul.f32 %v1548_v42, %v559_v29 }
  0xad   : > { %v725_v30 = vadd.f32 %v693_v28, %v531_v27 }
  0xae   : > { %v709_v44 = vadd.f32 %v677_v36, %v515_v32  ;;  %v429_v48 = vpop.permute.xlu2 %428 }
  0xaf   : > { %v757_v34 = vmax.f32 %v725_v30, 0.0  ;;  %v499_v17 = vmul.f32 %v1536_v35, %v429_v48 }
  0xb0   : > { %v741_v54 = vmax.f32 %v709_v44, 0.0 }
  0xb1   : > { %1380 = vset.pattern.permute.xlu1 %v1402_v1  ;;  %v779_v38 = vpack.c.bf16 %v757_v34, %v756_v31  ;;  %v534_v21 = vadd.f32 %v1541_v39, %v499_v17 }
  0xb2   : > { %378 = vperm.xlu1 %1380, %v294_v58   ;;  %v555_v41 = vpop.permute.xlu0 %554 }
  0xb3   : > { %v676_v45 = vmul.f32 %v1548_v42, %v555_v41  ;;  %v627_v46 = vpop.permute.xlu1 %626  ;;  %907 = vmatmul.bf16.gmra.mxu2 %v779_v38  ;;  %1381 = vset.pattern.permute.xlu2 %v1402_v1 }
  0xb4   : > { %383 = vperm.xlu2 %1381, %v295_v47   ;;  %v694_v52 = vmul.f32 %v1548_v42, %v627_v46 }
  0xb5   : > { %v708_v51 = vadd.f32 %v676_v45, %v514_v43  ;;  %v502_v45 = vmul.f32 %v1536_v35, %v1564_v61 }
  0xb6   : > { %v726_v57 = vadd.f32 %v694_v52, %v532_v53  ;;  %v1327_v52 = vld [vmem:[%s1861_s5 + $0x38] sm:$0xff] }
  0xb7   : > { %v740_v55 = vmax.f32 %v708_v51, 0.0  ;;  %v635_v3 = vpop.permute.xlu2 %634  ;;  %v537_v53 = vadd.f32 %v1541_v39, %v502_v45  ;;  %1336 = vmatpush.bf16.msra.mxu3 %v1327_v52  ;;  %1059 = vmatpush.bf16.msra.mxu1 %v1327_v52 }
  0xb8   : > { %v758_v2 = vmax.f32 %v726_v57, 0.0 }
  0xb9   : > { %v771_v58 = vpack.c.bf16 %v741_v54, %v740_v55 }
  0xba   : > { %1383 = vset.pattern.permute.xlu1 %v1401_v0  ;;  %v563_v6 = vpop.permute.xlu0 %562  ;;  %v780_v7 = vpack.c.bf16 %v759_v62, %v758_v2  ;;  %v1325_v2 = vld [vmem:[%s1861_s5 + $0x28] sm:$0xff] }
  0xbb   : > { %598 = vperm.xlu1 %1383, %v295_v47   ;;  %867 = vmatmul.bf16.gmra.mxu0 %v771_v58  ;;  %v678_v8 = vmul.f32 %v1548_v42, %v563_v6  ;;  %v1324_v6 = vld [vmem:[%s1861_s5 + $0x20] sm:$0xff] }
  0xbc   : > { %v339_v60 = vpop.permute.xlu1 %338  ;;  %468 = vperm.xlu2 %1381, %v312_v59  }
  0xbd   : > { %v481_v4 = vmul.f32 %v1536_v35, %v339_v60 }
  0xbf   : > { %v516_v10 = vadd.f32 %v1541_v39, %v481_v4 }
  0xc0   : > { %v354_v15 = vpop.permute.xlu2 %353 }
  0xc1   : > { %v710_v14 = vadd.f32 %v678_v8, %v516_v10  ;;  %v484_v34 = vmul.f32 %v1536_v35, %v354_v15 }
  0xc2   : > { %v639_v23 = vpop.permute.xlu0 %638 }
  0xc3   : > { %1384 = vset.pattern.permute.xlu1 %v1402_v1  ;;  %912 = vmatmul.bf16.gmra.mxu2 %v780_v7  ;;  %v742_v19 = vmax.f32 %v710_v14, 0.0  ;;  %v697_v25 = vmul.f32 %v1548_v42, %v639_v23  ;;  %v519_v40 = vadd.f32 %v1541_v39, %v484_v34 }
  0xc4   : > { %473 = vperm.xlu1 %1384, %v1569_v63   ;;  %1385 = vset.pattern.permute.xlu2 %v1401_v0  ;;  %v696_v63 = vmul.f32 %v1548_v42, %v635_v3 }
  0xc5   : > { %v567_v12 = vpop.permute.xlu1 %566  ;;  %666 = vperm.xlu2 %1385, %v312_v59   ;;  %v1326_v59 = vld [vmem:[%s1861_s5 + $0x30] sm:$0xff] }
  0xc6   : > { %v679_v13 = vmul.f32 %v1548_v42, %v567_v12  ;;  %v728_v27 = vadd.f32 %v696_v63, %v534_v21  ;;  %1337 = vmatpush.bf16.msra.mxu3 %v1326_v59  ;;  %1060 = vmatpush.bf16.msra.mxu1 %v1326_v59  ;;  %v1323_v12 = vld [vmem:[%s1861_s5 + $0x18] sm:$0xff]  ;;  %v1691_v59 = vld [vmem:[%s1860_s4] ss:$0 sm:$0xff] }
  0xc8   : > { %v711_v16 = vadd.f32 %v679_v13, %v517_v11  ;;  %v760_v30 = vmax.f32 %v728_v27, 0.0 }
  0xca   : > { %v743_v18 = vmax.f32 %v711_v16, 0.0  ;;  %v571_v38 = vpop.permute.xlu0 %570  ;;  %1338 = vmatpush.bf16.msra.mxu3 %v1325_v2  ;;  %1061 = vmatpush.bf16.msra.mxu1 %v1325_v2 }
  0xcb   : > { %v680_v41 = vmul.f32 %v1548_v42, %v571_v38 }
  0xcc   : > { %388 = vperm.xlu1 %1384, %v1580_v9   ;;  %v772_v20 = vpack.c.bf16 %v743_v18, %v742_v19  ;;  %v439_v9 = vpop.permute.xlu2 %438  ;;  %v1322_v19 = vld [vmem:[%s1861_s5 + $0x10] sm:$0xff] }
  0xcd   : > { %1386 = vset.pattern.permute.xlu2 %v1402_v1  ;;  %v501_v47 = vmul.f32 %v1536_v35, %v439_v9 }
  0xce   : > { %v434_v24 = vpop.permute.xlu1 %433  ;;  %872 = vmatmul.bf16.gmra.mxu0 %v772_v20  ;;  %393 = vperm.xlu2 %1386, %v297_v22  }
  0xcf   : > { %v500_v26 = vmul.f32 %v1536_v35, %v434_v24  ;;  %v536_v61 = vadd.f32 %v1541_v39, %v501_v47  ;;  %1339 = vmatpush.bf16.msra.mxu3 %v1324_v6  ;;  %1062 = vmatpush.bf16.msra.mxu1 %v1324_v6  ;;  %v1321_v24 = vld [vmem:[%s1861_s5 + $0x8] sm:$0xff] }
  0xd1   : > { %v535_v28 = vadd.f32 %v1541_v39, %v500_v26 }
  0xd2   : > { %v579_v8 = vpop.permute.xlu0 %578 }
  0xd3   : > { %v729_v29 = vadd.f32 %v697_v25, %v535_v28  ;;  %v682_v13 = vmul.f32 %v1548_v42, %v579_v8  ;;  %1340 = vmatpush.bf16.msra.mxu3 %v1323_v12  ;;  %1063 = vmatpush.bf16.msra.mxu1 %v1323_v12 }
  0xd4   : > { %1387 = vset.pattern.permute.xlu1 %v1401_v0  ;;  %v647_v36 = vpop.permute.xlu2 %646 }
  0xd5   : > { %606 = vperm.xlu1 %1387, %v297_v22   ;;  %v761_v31 = vmax.f32 %v729_v29, 0.0  ;;  %v699_v48 = vmul.f32 %v1548_v42, %v647_v36  ;;  %v1320_v29 = vld [vmem:[%s1861_s5] sm:$0xff] }
  0xd6   : > { %v349_v32 = vpop.permute.xlu1 %348 }
  0xd7   : > { %v781_v1 = vpack.c.bf16 %v761_v31, %v760_v30  ;;  %v483_v33 = vmul.f32 %v1536_v35, %v349_v32  ;;  %v731_v56 = vadd.f32 %v699_v48, %v537_v53  ;;  %1341 = vmatpush.bf16.msra.mxu3 %v1322_v19  ;;  %1064 = vmatpush.bf16.msra.mxu1 %v1322_v19 }
  0xd9   : > { %917 = vmatmul.bf16.gmra.mxu2 %v781_v1  ;;  %v518_v37 = vadd.f32 %v1541_v39, %v483_v33  ;;  %v763_v60 = vmax.f32 %v731_v56, 0.0 }
  0xda   : > { %v655_v21 = vpop.permute.xlu0 %654 }
  0xdb   : > { %v712_v44 = vadd.f32 %v680_v41, %v518_v37  ;;  %1342 = vmatpush.bf16.msra.mxu3 %v1321_v24  ;;  %1065 = vmatpush.bf16.msra.mxu1 %v1321_v24  ;;  %v701_v31 = vmul.f32 %v1548_v42, %v655_v21 }
  0xdc   : > { %v364_v51 = vpop.permute.xlu2 %363 }
  0xdd   : > { %v744_v50 = vmax.f32 %v712_v44, 0.0  ;;  %v486_v10 = vmul.f32 %v1536_v35, %v364_v51 }
  0xdf   : > { %v575_v43 = vpop.permute.xlu1 %574  ;;  %v521_v14 = vadd.f32 %v1541_v39, %v486_v10  ;;  %1343 = vmatpush.bf16.msra.mxu3 %v1320_v29  ;;  %1066 = vmatpush.bf16.msra.mxu1 %v1320_v29 }
  0xe0   : > { %v681_v0 = vmul.f32 %v1548_v42, %v575_v43 }
  0xe2   : > { %v713_v46 = vadd.f32 %v681_v0, %v519_v40  ;;  %v587_v33 = vpop.permute.xlu0 %586 }
  0xe4   : > { %v745_v49 = vmax.f32 %v713_v46, 0.0  ;;  %v449_v4 = vpop.permute.xlu2 %448  ;;  %v684_v46 = vmul.f32 %v1548_v42, %v587_v33 }
  0xe5   : > { %v503_v63 = vmul.f32 %v1536_v35, %v449_v4 }
  0xe6   : > { %v773_v54 = vpack.c.bf16 %v745_v49, %v744_v50 }
  0xe7   : > { %v643_v55 = vpop.permute.xlu1 %642  ;;  %v538_v27 = vadd.f32 %v1541_v39, %v503_v63 }
  0xe8   : > { %v698_v57 = vmul.f32 %v1548_v42, %v643_v55  ;;  %877 = vmatmul.bf16.gmra.mxu0 %v773_v54 }
  0xea   : > { %v730_v58 = vadd.f32 %v698_v57, %v536_v61 }
  0xeb   : > { %v464_v44 = vpop.permute.xlu0 %463 }
  0xec   : > { %v762_v62 = vmax.f32 %v730_v58, 0.0  ;;  %v651_v15 = vpop.permute.xlu2 %650  ;;  %v506_v48 = vmul.f32 %v1536_v35, %v464_v44 }
  0xed   : > { %v700_v28 = vmul.f32 %v1548_v42, %v651_v15 }
  0xee   : > { %v782_v3 = vpack.c.bf16 %v763_v60, %v762_v62  ;;  %v541_v55 = vadd.f32 %v1541_v39, %v506_v48 }
  0xef   : > { %v732_v32 = vadd.f32 %v700_v28, %v538_v27 }
  0xf0   : > { %v359_v5 = vpop.permute.xlu1 %358  ;;  %922 = vmatmul.bf16.gmra.mxu2 %v782_v3 }
  0xf1   : > { %v485_v7 = vmul.f32 %v1536_v35, %v359_v5  ;;  %v764_v36 = vmax.f32 %v732_v32, 0.0 }
  0xf3   : > { %v520_v11 = vadd.f32 %v1541_v39, %v485_v7 }
  0xf4   : > { %v374_v26 = vpop.permute.xlu2 %373  ;;  %v595_v63 = vpop.permute.xlu0 %594 }
  0xf5   : > { %v714_v18 = vadd.f32 %v682_v13, %v520_v11  ;;  %v488_v0 = vmul.f32 %v1536_v35, %v374_v26 }
  0xf7   : > { %v746_v23 = vmax.f32 %v714_v18, 0.0  ;;  %v523_v47 = vadd.f32 %v1541_v39, %v488_v0 }
  0xf9   : > { %v583_v16 = vpop.permute.xlu1 %582 }
  0xfa   : > { %v683_v17 = vmul.f32 %v1548_v42, %v583_v16 }
  0xfc   : > { %v715_v20 = vadd.f32 %v683_v17, %v521_v14  ;;  %v459_v40 = vpop.permute.xlu2 %458 }
  0xfd   : > { %v505_v56 = vmul.f32 %v1536_v35, %v459_v40 }
  0xfe   : > { %v747_v22 = vmax.f32 %v715_v20, 0.0 }
  0xff   : > { %v540_v3 = vadd.f32 %v1541_v39, %v505_v56 }
 0x100   : > { %v774_v25 = vpack.c.bf16 %v747_v22, %v746_v23  ;;  %v686_v22 = vmul.f32 %v1548_v42, %v595_v63 }
 0x102   : > { %v454_v9 = vpop.permute.xlu1 %453  ;;  %882 = vmatmul.bf16.gmra.mxu0 %v774_v25 }
 0x103   : > { %v504_v30 = vmul.f32 %v1536_v35, %v454_v9 }
 0x105   : > { %v539_v1 = vadd.f32 %v1541_v39, %v504_v30  ;;  %v663_v51 = vpop.permute.xlu2 %662 }
 0x106   : > { %v703_v54 = vmul.f32 %v1548_v42, %v663_v51 }
 0x107   : > { %v733_v34 = vadd.f32 %v701_v31, %v539_v1 }
 0x108   : > { %v735_v62 = vadd.f32 %v703_v54, %v541_v55 }
 0x109   : > { %v765_v37 = vmax.f32 %v733_v34, 0.0 }
 0x10a   : > { %v369_v38 = vpop.permute.xlu1 %368  ;;  %v767_v8 = vmax.f32 %v735_v62, 0.0 }
 0x10b   : > { %v783_v41 = vpack.c.bf16 %v765_v37, %v764_v36  ;;  %v487_v43 = vmul.f32 %v1536_v35, %v369_v38 }
 0x10d   : > { %927 = vmatmul.bf16.gmra.mxu2 %v783_v41  ;;  %v522_v45 = vadd.f32 %v1541_v39, %v487_v43 }
 0x10e   : > { %v384_v7 = vpop.permute.xlu2 %383 }
 0x10f   : > { %v716_v52 = vadd.f32 %v684_v46, %v522_v45  ;;  %v490_v19 = vmul.f32 %v1536_v35, %v384_v7  ;;  %v671_v45 = vpop.permute.xlu0 %670 }
 0x111   : > { %v748_v58 = vmax.f32 %v716_v52, 0.0  ;;  %v525_v24 = vadd.f32 %v1541_v39, %v490_v19 }
 0x113   : > { %v591_v49 = vpop.permute.xlu1 %590 }
 0x114   : > { %v685_v50 = vmul.f32 %v1548_v42, %v591_v49 }
 0x116   : > { %v717_v53 = vadd.f32 %v685_v50, %v523_v47  ;;  %v469_v20 = vpop.permute.xlu2 %468  ;;  %v705_v47 = vmul.f32 %v1548_v42, %v671_v45 }
 0x117   : > { %v903_v61 = vpop.f32.mrf.mxu2  ;;  %v507_v30 = vmul.f32 %v1536_v35, %v469_v20 }
 0x118   : > { %v749_v57 = vmax.f32 %v717_v53, 0.0  ;;  %v904_v5 = vadd.f32 %v1691_v59, %v903_v61 }
 0x119   : > { %v542_v38 = vadd.f32 %v1541_v39, %v507_v30 }
 0x11a   : > { %v775_v60 = vpack.c.bf16 %v749_v57, %v748_v58  ;;  %v959_v13 = vmax.f32 %v904_v5, 0.0 }
 0x11b   : > { %v659_v2 = vpop.permute.xlu1 %658 }
 0x11c   : > { %v702_v4 = vmul.f32 %v1548_v42, %v659_v2  ;;  %887 = vmatmul.bf16.gmra.mxu0 %v775_v60 }
 0x11e   : > { %v734_v6 = vadd.f32 %v702_v4, %v540_v3 }
 0x11f   : > { %v905_v10 = vpop.f32.mrf.mxu2  ;;  %v667_v32 = vpop.permute.xlu2 %666 }
 0x120   : > { %v766_v11 = vmax.f32 %v734_v6, 0.0  ;;  %v906_v12 = vadd.f32 %v1691_v59, %v905_v10  ;;  %v704_v40 = vmul.f32 %v1548_v42, %v667_v32  ;;  %v603_v6 = vpop.permute.xlu0 %602 }
 0x122   : > { %v960_v14 = vmax.f32 %v906_v12, 0.0  ;;  %v784_v15 = vpack.c.bf16 %v767_v8, %v766_v11  ;;  %v736_v48 = vadd.f32 %v704_v40, %v542_v38 }
 0x124   : > { %v379_v16 = vpop.permute.xlu1 %378  ;;  %932 = vmatmul.bf16.gmra.mxu2 %v784_v15  ;;  %v983_v17 = vpack.c.bf16 %v960_v14, %v959_v13  ;;  %v768_v51 = vmax.f32 %v736_v48, 0.0  ;;  %v688_v13 = vmul.f32 %v1548_v42, %v603_v6 }
 0x125   : > { %v489_v18 = vmul.f32 %v1536_v35, %v379_v16 }
 0x126   : > { %1107 = vmatmul.bf16.vlgmr.msra.gmra.mxu3 %v983_v17 }
 0x127   : > { %v524_v23 = vadd.f32 %v1541_v39, %v489_v18 }
 0x128   : > { %v863_v21 = vpop.f32.mrf.mxu0  ;;  %v394_v58 = vpop.permute.xlu2 %393 }
 0x129   : > { %v718_v27 = vadd.f32 %v686_v22, %v524_v23  ;;  %v864_v28 = vadd.f32 %v1691_v59, %v863_v21  ;;  %v492_v5 = vmul.f32 %v1536_v35, %v394_v58 }
 0x12b   : > { %v750_v33 = vmax.f32 %v718_v27, 0.0  ;;  %v943_v34 = vmax.f32 %v864_v28, 0.0  ;;  %v527_v14 = vadd.f32 %v1541_v39, %v492_v5 }
 0x12d   : > { %v599_v25 = vpop.permute.xlu1 %598 }
 0x12e   : > { %v687_v26 = vmul.f32 %v1548_v42, %v599_v25 }
 0x130   : > { %v719_v9 = vadd.f32 %v687_v26, %v525_v24  ;;  %v865_v29 = vpop.f32.mrf.mxu0 }
 0x131   : > { %v866_v31 = vadd.f32 %v1691_v59, %v865_v29 }
 0x132   : > { %v751_v1 = vmax.f32 %v719_v9, 0.0 }
 0x133   : > { %v944_v36 = vmax.f32 %v866_v31, 0.0 }
 0x134   : > { %v776_v37 = vpack.c.bf16 %v751_v1, %v750_v33 }
 0x135   : > { %v975_v41 = vpack.c.bf16 %v944_v36, %v943_v34 }
 0x136   : > { %v474_v43 = vpop.permute.xlu1 %473  ;;  %892 = vmatmul.bf16.gmra.mxu0 %v776_v37  ;;  %v908_v0 = vpop.f32.mrf.mxu2 }
 0x137   : > { %v508_v44 = vmul.f32 %v1536_v35, %v474_v43  ;;  %1067 = vmatmul.bf16.vlgmr.msra.gmra.mxu1 %v975_v41  ;;  %v909_v52 = vadd.f32 %v1691_v59, %v908_v0 }
 0x138   : > { %v868_v46 = vpop.f32.mrf.mxu0 }
 0x139   : > { %v543_v49 = vadd.f32 %v1541_v39, %v508_v44  ;;  %v869_v61 = vadd.f32 %v1691_v59, %v868_v46  ;;  %v961_v2 = vmax.f32 %v909_v52, 0.0 }
 0x13b   : > { %v737_v50 = vadd.f32 %v705_v47, %v543_v49  ;;  %v945_v7 = vmax.f32 %v869_v61, 0.0 }
 0x13d   : > { %v769_v53 = vmax.f32 %v737_v50, 0.0 }
 0x13e   : > { %v389_v54 = vpop.permute.xlu1 %388  ;;  %v910_v55 = vpop.f32.mrf.mxu2 }
 0x13f   : > { %v911_v56 = vadd.f32 %v1691_v59, %v910_v55  ;;  %v785_v57 = vpack.c.bf16 %v769_v53, %v768_v51  ;;  %v491_v60 = vmul.f32 %v1536_v35, %v389_v54 }
 0x140   : > { %v870_v62 = vpop.f32.mrf.mxu0 }
 0x141   : > { %v962_v3 = vmax.f32 %v911_v56, 0.0  ;;  %v871_v4 = vadd.f32 %v1691_v59, %v870_v62  ;;  %937 = vmatmul.bf16.gmra.mxu2 %v785_v57  ;;  %v526_v11 = vadd.f32 %v1541_v39, %v491_v60 }
 0x143   : > { %v946_v8 = vmax.f32 %v871_v4, 0.0  ;;  %v984_v10 = vpack.c.bf16 %v962_v3, %v961_v2  ;;  %v720_v18 = vadd.f32 %v688_v13, %v526_v11 }
 0x145   : > { %1112 = vmatmul.bf16.gmra.mxu3 %v984_v10  ;;  %v976_v12 = vpack.c.bf16 %v946_v8, %v945_v7  ;;  %v752_v21 = vmax.f32 %v720_v18, 0.0 }
 0x146   : > { %v913_v15 = vpop.f32.mrf.mxu2 }
 0x147   : > { %v607_v16 = vpop.permute.xlu1 %606  ;;  %1072 = vmatmul.bf16.gmra.mxu1 %v976_v12  ;;  %v914_v63 = vadd.f32 %v1691_v59, %v913_v15  ;;  %v1740_v15 = vld [vmem:[%s1862_s6] ss:$0 sm:$0xff] }
 0x148   : > { %v689_v17 = vmul.f32 %v1548_v42, %v607_v16 }
 0x149   : > { %v963_v25 = vmax.f32 %v914_v63, 0.0 }
 0x14a   : > { %v721_v19 = vadd.f32 %v689_v17, %v527_v14 }
 0x14b   : > { %v873_v35 = vpop.f32.mrf.mxu0 }
 0x14c   : > { %v753_v20 = vmax.f32 %v721_v19, 0.0  ;;  %v874_v39 = vadd.f32 %v1691_v59, %v873_v35 }
 0x14e   : > { %v915_v22 = vpop.f32.mrf.mxu2  ;;  %v777_v23 = vpack.c.bf16 %v753_v20, %v752_v21  ;;  %v947_v9 = vmax.f32 %v874_v39, 0.0 }
 0x14f   : > { %v916_v24 = vadd.f32 %v1691_v59, %v915_v22 }
 0x150   : > { %897 = vmatmul.bf16.gmra.mxu0 %v777_v23 }
 0x151   : > { %v964_v26 = vmax.f32 %v916_v24, 0.0 }
 0x153   : > { %v875_v27 = vpop.f32.mrf.mxu0  ;;  %v985_v28 = vpack.c.bf16 %v964_v26, %v963_v25 }
 0x154   : > { %v876_v42 = vadd.f32 %v1691_v59, %v875_v27 }
 0x155   : > { %1117 = vmatmul.bf16.gmra.mxu3 %v985_v28 }
 0x156   : > { %v948_v29 = vmax.f32 %v876_v42, 0.0 }
 0x158   : > { %v977_v30 = vpack.c.bf16 %v948_v29, %v947_v9 }
 0x15a   : > { %1077 = vmatmul.bf16.gmra.mxu1 %v977_v30 }
 0x15c   : > { %v918_v31 = vpop.f32.mrf.mxu2 }
 0x15d   : > { %v919_v32 = vadd.f32 %v1691_v59, %v918_v31 }
 0x15f   : > { %v965_v36 = vmax.f32 %v919_v32, 0.0 }
 0x164   : > { %v920_v1 = vpop.f32.mrf.mxu2 }
 0x165   : > { %v921_v33 = vadd.f32 %v1691_v59, %v920_v1  ;;  %v878_v34 = vpop.f32.mrf.mxu0 }
 0x166   : > { %v879_v40 = vadd.f32 %v1691_v59, %v878_v34 }
 0x167   : > { %v966_v37 = vmax.f32 %v921_v33, 0.0 }
 0x168   : > { %v949_v0 = vmax.f32 %v879_v40, 0.0 }
 0x169   : > { %v986_v38 = vpack.c.bf16 %v966_v37, %v965_v36 }
 0x16b   : > { %1122 = vmatmul.bf16.gmra.mxu3 %v986_v38 }
 0x16d   : > { %v880_v41 = vpop.f32.mrf.mxu0 }
 0x16e   : > { %v881_v43 = vadd.f32 %v1691_v59, %v880_v41 }
 0x170   : > { %v950_v44 = vmax.f32 %v881_v43, 0.0 }
 0x172   : > { %v978_v45 = vpack.c.bf16 %v950_v44, %v949_v0 }
 0x173   : > { %v923_v46 = vpop.f32.mrf.mxu2 }
 0x174   : > { %1082 = vmatmul.bf16.gmra.mxu1 %v978_v45  ;;  %v924_v47 = vadd.f32 %v1691_v59, %v923_v46 }
 0x176   : > { %v967_v50 = vmax.f32 %v924_v47, 0.0 }
 0x17b   : > { %v925_v48 = vpop.f32.mrf.mxu2 }
 0x17c   : > { %v926_v49 = vadd.f32 %v1691_v59, %v925_v48 }
 0x17e   : > { %v968_v51 = vmax.f32 %v926_v49, 0.0 }
 0x17f   : > { %v883_v52 = vpop.f32.mrf.mxu0 }
 0x180   : > { %v987_v53 = vpack.c.bf16 %v968_v51, %v967_v50  ;;  %v884_v54 = vadd.f32 %v1691_v59, %v883_v52 }
 0x182   : > { %1127 = vmatmul.bf16.gmra.mxu3 %v987_v53  ;;  %v951_v56 = vmax.f32 %v884_v54, 0.0 }
 0x187   : > { %v885_v55 = vpop.f32.mrf.mxu0 }
 0x188   : > { %v886_v61 = vadd.f32 %v1691_v59, %v885_v55 }
 0x18a   : > { %v952_v57 = vmax.f32 %v886_v61, 0.0 }
 0x18c   : > { %v979_v58 = vpack.c.bf16 %v952_v57, %v951_v56 }
 0x18e   : > { %1087 = vmatmul.bf16.gmra.mxu1 %v979_v58 }
 0x190   : > { %v928_v60 = vpop.f32.mrf.mxu2 }
 0x191   : > { %v929_v62 = vadd.f32 %v1691_v59, %v928_v60 }
 0x193   : > { %v969_v5 = vmax.f32 %v929_v62, 0.0 }
 0x198   : > { %v930_v2 = vpop.f32.mrf.mxu2 }
 0x199   : > { %v931_v3 = vadd.f32 %v1691_v59, %v930_v2  ;;  %v888_v4 = vpop.f32.mrf.mxu0 }
 0x19a   : > { %v889_v8 = vadd.f32 %v1691_v59, %v888_v4 }
 0x19b   : > { %v970_v6 = vmax.f32 %v931_v3, 0.0 }
 0x19c   : > { %v953_v12 = vmax.f32 %v889_v8, 0.0 }
 0x19d   : > { %v988_v7 = vpack.c.bf16 %v970_v6, %v969_v5 }
 0x19f   : > { %1132 = vmatmul.bf16.gmra.mxu3 %v988_v7 }
 0x1a1   : > { %v890_v10 = vpop.f32.mrf.mxu0 }
 0x1a2   : > { %v891_v11 = vadd.f32 %v1691_v59, %v890_v10 }
 0x1a4   : > { %v954_v13 = vmax.f32 %v891_v11, 0.0 }
 0x1a6   : > { %v980_v14 = vpack.c.bf16 %v954_v13, %v953_v12 }
 0x1a7   : > { %v933_v16 = vpop.f32.mrf.mxu2 }
 0x1a8   : > { %1092 = vmatmul.bf16.gmra.mxu1 %v980_v14  ;;  %v934_v19 = vadd.f32 %v1691_v59, %v933_v16 }
 0x1a9   : > { %v1108_v17 = vpop.f32.mrf.mxu3 }
 0x1aa   : > { %v1109_v18 = vadd.f32 %v1740_v15, %v1108_v17  ;;  %v971_v63 = vmax.f32 %v934_v19, 0.0 }
 0x1ac   : > { %1165 = vst.msk [vmem:[%s1747_s12 + $0x80] sm:$0xff] %vm1148_vm0, %v1109_v18 }
 0x1af   : > { %v935_v35 = vpop.f32.mrf.mxu2 }
 0x1b0   : > { %v936_v20 = vadd.f32 %v1691_v59, %v935_v35 }
 0x1b1   : > { %v1110_v21 = vpop.f32.mrf.mxu3 }
 0x1b2   : > { %v972_v22 = vmax.f32 %v936_v20, 0.0  ;;  %v1111_v23 = vadd.f32 %v1740_v15, %v1110_v21 }
 0x1b3   : > { %v893_v24 = vpop.f32.mrf.mxu0 }
 0x1b4   : > { %1166 = vst.msk [vmem:[%s1747_s12 + $0x88] sm:$0xff] %vm1148_vm0, %v1111_v23  ;;  %v1068_v25 = vpop.f32.mrf.mxu1  ;;  %v989_v26 = vpack.c.bf16 %v972_v22, %v971_v63  ;;  %v894_v27 = vadd.f32 %v1691_v59, %v893_v24 }
 0x1b5   : > { %v1069_v39 = vadd.f32 %v1740_v15, %v1068_v25 }
 0x1b6   : > { %1137 = vmatmul.bf16.gmra.mxu3 %v989_v26  ;;  %v955_v30 = vmax.f32 %v894_v27, 0.0 }
 0x1b7   : > { %1149 = vst.msk [vmem:[%s1747_s12] sm:$0xff] %vm1148_vm0, %v1069_v39 }
 0x1bb   : > { %v895_v28 = vpop.f32.mrf.mxu0 }
 0x1bc   : > { %v896_v42 = vadd.f32 %v1691_v59, %v895_v28  ;;  %v1070_v9 = vpop.f32.mrf.mxu1 }
 0x1bd   : > { %v1071_v29 = vadd.f32 %v1740_v15, %v1070_v9 }
 0x1be   : > { %v956_v31 = vmax.f32 %v896_v42, 0.0 }
 0x1bf   : > { %1150 = vst.msk [vmem:[%s1747_s12 + $0x8] sm:$0xff] %vm1148_vm0, %v1071_v29 }
 0x1c0   : > { %v981_v32 = vpack.c.bf16 %v956_v31, %v955_v30 }
 0x1c2   : > { %1097 = vmatmul.bf16.gmra.mxu1 %v981_v32 }
 0x1c4   : > { %v938_v1 = vpop.f32.mrf.mxu2  ;;  %v1073_v33 = vpop.f32.mrf.mxu1 }
 0x1c5   : > { %v1074_v34 = vadd.f32 %v1740_v15, %v1073_v33  ;;  %v939_v38 = vadd.f32 %v1691_v59, %v938_v1 }
 0x1c7   : > { %1151 = vst.msk [vmem:[%s1747_s12 + $0x10] sm:$0xff] %vm1148_vm0, %v1074_v34  ;;  %v973_v45 = vmax.f32 %v939_v38, 0.0 }
 0x1c8   : > { %v1113_v36 = vpop.f32.mrf.mxu3 }
 0x1c9   : > { %v1114_v37 = vadd.f32 %v1740_v15, %v1113_v36 }
 0x1cb   : > { %1167 = vst.msk [vmem:[%s1747_s12 + $0x90] sm:$0xff] %vm1148_vm0, %v1114_v37 }
 0x1cc   : > { %v940_v40 = vpop.f32.mrf.mxu2  ;;  %v1075_v41 = vpop.f32.mrf.mxu1 }
 0x1cd   : > { %v941_v43 = vadd.f32 %v1691_v59, %v940_v40  ;;  %v1076_v0 = vadd.f32 %v1740_v15, %v1075_v41  ;;  %v898_v44 = vpop.f32.mrf.mxu0 }
 0x1ce   : > { %v899_v50 = vadd.f32 %v1691_v59, %v898_v44 }
 0x1cf   : > { %v974_v46 = vmax.f32 %v941_v43, 0.0  ;;  %1152 = vst.msk [vmem:[%s1747_s12 + $0x18] sm:$0xff] %vm1148_vm0, %v1076_v0 }
 0x1d0   : > { %v1115_v47 = vpop.f32.mrf.mxu3  ;;  %v957_v54 = vmax.f32 %v899_v50, 0.0 }
 0x1d1   : > { %v1116_v48 = vadd.f32 %v1740_v15, %v1115_v47  ;;  %v990_v49 = vpack.c.bf16 %v974_v46, %v973_v45 }
 0x1d3   : > { %1168 = vst.msk [vmem:[%s1747_s12 + $0x98] sm:$0xff] %vm1148_vm0, %v1116_v48  ;;  %1142 = vmatmul.bf16.gmra.mxu3 %v990_v49 }
 0x1d5   : > { %v900_v51 = vpop.f32.mrf.mxu0 }
 0x1d6   : > { %v901_v52 = vadd.f32 %v1691_v59, %v900_v51 }
 0x1d7   : > { %v1078_v53 = vpop.f32.mrf.mxu1 }
 0x1d8   : > { %v958_v55 = vmax.f32 %v901_v52, 0.0  ;;  %v1079_v61 = vadd.f32 %v1740_v15, %v1078_v53  ;;  %v1118_v56 = vpop.f32.mrf.mxu3 }
 0x1d9   : > { %v1119_v57 = vadd.f32 %v1740_v15, %v1118_v56 }
 0x1da   : > { %1153 = vst.msk [vmem:[%s1747_s12 + $0x20] sm:$0xff] %vm1148_vm0, %v1079_v61  ;;  %v982_v58 = vpack.c.bf16 %v958_v55, %v957_v54 }
 0x1db   : > { %1169 = vst.msk [vmem:[%s1747_s12 + $0xa0] sm:$0xff] %vm1148_vm0, %v1119_v57 }
 0x1dc   : > { %1102 = vmatmul.bf16.gmra.mxu1 %v982_v58 }
 0x1df   : > { %v1080_v60 = vpop.f32.mrf.mxu1 }
 0x1e0   : > { %v1081_v59 = vadd.f32 %v1740_v15, %v1080_v60  ;;  %v1120_v62 = vpop.f32.mrf.mxu3 }
 0x1e1   : > { %v1121_v2 = vadd.f32 %v1740_v15, %v1120_v62 }
 0x1e2   : > { %1154 = vst.msk [vmem:[%s1747_s12 + $0x28] sm:$0xff] %vm1148_vm0, %v1081_v59 }
 0x1e3   : > { %1170 = vst.msk [vmem:[%s1747_s12 + $0xa8] sm:$0xff] %vm1148_vm0, %v1121_v2 }
 0x1ee   : > { %v1123_v3 = vpop.f32.mrf.mxu3 }
 0x1ef   : > { %v1124_v4 = vadd.f32 %v1740_v15, %v1123_v3 }
 0x1f1   : > { %1171 = vst.msk [vmem:[%s1747_s12 + $0xb0] sm:$0xff] %vm1148_vm0, %v1124_v4  ;;  %v1083_v5 = vpop.f32.mrf.mxu1 }
 0x1f2   : > { %v1084_v6 = vadd.f32 %v1740_v15, %v1083_v5 }
 0x1f4   : > { %1155 = vst.msk [vmem:[%s1747_s12 + $0x30] sm:$0xff] %vm1148_vm0, %v1084_v6 }
 0x1f6   : > { %v1125_v7 = vpop.f32.mrf.mxu3 }
 0x1f7   : > { %v1126_v8 = vadd.f32 %v1740_v15, %v1125_v7 }
 0x1f9   : > { %1172 = vst.msk [vmem:[%s1747_s12 + $0xb8] sm:$0xff] %vm1148_vm0, %v1126_v8  ;;  %v1085_v10 = vpop.f32.mrf.mxu1 }
 0x1fa   : > { %v1086_v11 = vadd.f32 %v1740_v15, %v1085_v10 }
 0x1fc   : > { %1156 = vst.msk [vmem:[%s1747_s12 + $0x38] sm:$0xff] %vm1148_vm0, %v1086_v11 }
 0x205   : > { %v1128_v12 = vpop.f32.mrf.mxu3 }
 0x206   : > { %v1129_v13 = vadd.f32 %v1740_v15, %v1128_v12 }
 0x208   : > { %1173 = vst.msk [vmem:[%s1747_s12 + $0xc0] sm:$0xff] %vm1148_vm0, %v1129_v13 }
 0x20b   : > { %v1088_v14 = vpop.f32.mrf.mxu1 }
 0x20c   : > { %v1089_v16 = vadd.f32 %v1740_v15, %v1088_v14 }
 0x20d   : > { %v1130_v17 = vpop.f32.mrf.mxu3 }
 0x20e   : > { %1157 = vst.msk [vmem:[%s1747_s12 + $0x40] sm:$0xff] %vm1148_vm0, %v1089_v16  ;;  %v1131_v18 = vadd.f32 %v1740_v15, %v1130_v17 }
 0x210   : > { %1174 = vst.msk [vmem:[%s1747_s12 + $0xc8] sm:$0xff] %vm1148_vm0, %v1131_v18 }
 0x213   : > { %v1090_v19 = vpop.f32.mrf.mxu1 }
 0x214   : > { %v1091_v35 = vadd.f32 %v1740_v15, %v1090_v19 }
 0x216   : > { %1158 = vst.msk [vmem:[%s1747_s12 + $0x48] sm:$0xff] %vm1148_vm0, %v1091_v35 }
 0x222   : > { %v1133_v20 = vpop.f32.mrf.mxu3 }
 0x223   : > { %v1134_v21 = vadd.f32 %v1740_v15, %v1133_v20 }
 0x225   : > { %1175 = vst.msk [vmem:[%s1747_s12 + $0xd0] sm:$0xff] %vm1148_vm0, %v1134_v21  ;;  %v1093_v63 = vpop.f32.mrf.mxu1 }
 0x226   : > { %v1094_v22 = vadd.f32 %v1740_v15, %v1093_v63 }
 0x228   : > { %1159 = vst.msk [vmem:[%s1747_s12 + $0x50] sm:$0xff] %vm1148_vm0, %v1094_v22 }
 0x22a   : > { %v1135_v23 = vpop.f32.mrf.mxu3 }
 0x22b   : > { %v1136_v24 = vadd.f32 %v1740_v15, %v1135_v23 }
 0x22d   : > { %1176 = vst.msk [vmem:[%s1747_s12 + $0xd8] sm:$0xff] %vm1148_vm0, %v1136_v24  ;;  %v1095_v25 = vpop.f32.mrf.mxu1 }
 0x22e   : > { %v1096_v26 = vadd.f32 %v1740_v15, %v1095_v25 }
 0x230   : > { %1160 = vst.msk [vmem:[%s1747_s12 + $0x58] sm:$0xff] %vm1148_vm0, %v1096_v26 }
 0x239   : > { %v1138_v39 = vpop.f32.mrf.mxu3 }
 0x23a   : > { %v1139_v27 = vadd.f32 %v1740_v15, %v1138_v39 }
 0x23c   : > { %1177 = vst.msk [vmem:[%s1747_s12 + $0xe0] sm:$0xff] %vm1148_vm0, %v1139_v27 }
 0x23f   : > { %v1098_v28 = vpop.f32.mrf.mxu1 }
 0x240   : > { %v1099_v42 = vadd.f32 %v1740_v15, %v1098_v28 }
 0x241   : > { %v1140_v9 = vpop.f32.mrf.mxu3 }
 0x242   : > { %1161 = vst.msk [vmem:[%s1747_s12 + $0x60] sm:$0xff] %vm1148_vm0, %v1099_v42  ;;  %v1141_v29 = vadd.f32 %v1740_v15, %v1140_v9 }
 0x244   : > { %1178 = vst.msk [vmem:[%s1747_s12 + $0xe8] sm:$0xff] %vm1148_vm0, %v1141_v29 }
 0x247   : > { %v1100_v30 = vpop.f32.mrf.mxu1 }
 0x248   : > { %v1101_v31 = vadd.f32 %v1740_v15, %v1100_v30 }
 0x24a   : > { %1162 = vst.msk [vmem:[%s1747_s12 + $0x68] sm:$0xff] %vm1148_vm0, %v1101_v31 }
 0x256   : > { %v1143_v32 = vpop.f32.mrf.mxu3 }
 0x257   : > { %v1144_v1 = vadd.f32 %v1740_v15, %v1143_v32 }
 0x259   : > { %1179 = vst.msk [vmem:[%s1747_s12 + $0xf0] sm:$0xff] %vm1148_vm0, %v1144_v1  ;;  %v1103_v33 = vpop.f32.mrf.mxu1 }
 0x25a   : > { %v1104_v34 = vadd.f32 %v1740_v15, %v1103_v33 }
 0x25c   : > { %1163 = vst.msk [vmem:[%s1747_s12 + $0x70] sm:$0xff] %vm1148_vm0, %v1104_v34 }
 0x25e   : > { %v1145_v36 = vpop.f32.mrf.mxu3 }
 0x25f   : > { %v1146_v37 = vadd.f32 %v1740_v15, %v1145_v36 }
 0x261   : > { %1180 = vst.msk [vmem:[%s1747_s12 + $0xf8] sm:$0xff] %vm1148_vm0, %v1146_v37  ;;  %v1105_v38 = vpop.f32.mrf.mxu1 }
 0x262   : > { %v1106_v40 = vadd.f32 %v1740_v15, %v1105_v38 }
 0x264   : > { %1164 = vst.msk [vmem:[%s1747_s12 + $0x78] sm:$0xff] %vm1148_vm0, %v1106_v40 }
 0x265 PF: > { %s17_s24 = sadd.s32 1, %s1399_s24  }
 0x266   : > { %p14_p4 = scmp.ge.s32.totalorder %s17_s24, 4  }
 0x268   :  { %16 = sbr.rel (!%p14_p4) target bundleno = 1 (0x1), region = 78 }

</bundles_post_ra>
